<compile_context>
chip_gen: v7x
topology: tpu7x:2x2x1
jax: 0.10.0
libtpu: 0.0.40
codegen_flags: <defaults>
</compile_context>

<pallas_src>
import math

import jax
import jax.numpy as jnp
from jax.experimental import pallas as pl
from jax.experimental.pallas import tpu as pltpu


def _round_up(x, m):
    return ((x + m - 1) // m) * m


# ------------------------------ Pallas kernels ------------------------------ #

def _fused_gcn_kernel(adj_ref, x_ref, w_ref, b_ref, o_ref):
    """out[i] = sum_k adj[i, k] @ (x[k] @ W) + bias, accumulated in f32.

    Grid = (row tile i, contraction tile k).  The output block index (i, 0) is
    constant across k, so o_ref itself is the f32 accumulator: bias-init at
    k == 0, '+=' every step, HBM writeback only when i changes.
    """
    k = pl.program_id(1)

    @pl.when(k == 0)
    def _():
        o_ref[...] = jnp.broadcast_to(b_ref[...], o_ref.shape)

    # k-tile of support, recomputed per row tile (cheap when f_in << block).
    support = jnp.dot(x_ref[...], w_ref[...],
                      preferred_element_type=jnp.float32)
    o_ref[...] += jnp.dot(adj_ref[...], support.astype(adj_ref.dtype),
                          preferred_element_type=jnp.float32)


def _support_kernel(x_ref, w_ref, o_ref):
    # Two-pass fallback, pass 1: support = x @ W (row tiled, W resident).
    o_ref[...] = jnp.dot(
        x_ref[...], w_ref[...], preferred_element_type=jnp.float32
    ).astype(o_ref.dtype)


def _aggregate_kernel(adj_ref, sup_ref, b_ref, o_ref):
    # Two-pass fallback, pass 2: out = adj @ support + bias, k-tiled,
    # accumulating directly into the f32 output block (no scratch).
    k = pl.program_id(1)

    @pl.when(k == 0)
    def _():
        o_ref[...] = jnp.broadcast_to(b_ref[...], o_ref.shape)

    o_ref[...] += jnp.dot(adj_ref[...], sup_ref[...],
                          preferred_element_type=jnp.float32)


# --------------------------------- helpers ----------------------------------- #

def _pad_cast(a, shape, dtype):
    """Cast first (narrower dtype -> half the pad traffic), then zero-pad.
    No-ops when already aligned, so no redundant padded copy of adj."""
    a = a.astype(dtype)
    if a.shape == tuple(shape):
        return a
    return jnp.pad(a, [(0, t - s) for s, t in zip(a.shape, shape)])


def _vmem_limit(plan_bytes):
    # Cap below v7x's 64 MiB/TC physical VMEM; floor at the usual scoped
    # default so tiny plans don't over-constrain the compiler.
    return int(min(56 << 20, max(plan_bytes + (4 << 20), 32 << 20)))


def _choose_block(n, requested):
    """block_m == block_k == block: multiple of 128 (lane dim of the adj tile),
    clamped for small graphs, halved when that gives >= 2 row tiles without
    adding padding (v7x megacore shards the 'parallel' row axis)."""
    block = max(128, min(requested, _round_up(n, 128)))
    n_pad = _round_up(n, block)
    if n_pad // block < 2 and block > 128:
        half = _round_up(block // 2, 128)
        if _round_up(n, half) <= n_pad:
            block = half
            n_pad = _round_up(n, half)
    return block, n_pad


# --------------------------------- wrapper ------------------------------------ #

def graph_convolution(x, adj, weight, bias=None, *,
                      block=512, matmul_dtype=jnp.bfloat16, fuse_threshold=512):
    """Pallas GraphConvolution.forward: adj @ (x @ weight) (+ bias).

    MXU inputs are cast to `matmul_dtype` (bf16 default); accumulation and the
    output are always f32.  Use matmul_dtype=jnp.float32 for exact math.
    """
    n, f_in = x.shape
    f_out = weight.shape[1]
    mm_bytes = jnp.dtype(matmul_dtype).itemsize

    blk, n_pad = _choose_block(n, block)
    f_in_pad = _round_up(f_in, 128)
    f_out_pad = _round_up(f_out, 128)

    xp = _pad_cast(x, (n_pad, f_in_pad), matmul_dtype)
    adjp = _pad_cast(adj, (n_pad, n_pad), matmul_dtype)
    wp = _pad_cast(weight, (f_in_pad, f_out_pad), matmul_dtype)
    if bias is None:
        bp = jnp.zeros((1, f_out_pad), jnp.float32)
    else:
        bp = _pad_cast(bias.reshape(1, -1), (1, f_out_pad), jnp.float32)

    grid_m = n_pad // blk
    grid_k = n_pad // blk

    if f_in_pad <= fuse_threshold:
        # ---------- fused single pass: out = adj @ (x @ W) + bias ------------ #
        plan = 2 * (blk * blk * mm_bytes              # adj (double-buffered)
                    + blk * f_in_pad * mm_bytes       # x
                    + f_in_pad * f_out_pad * mm_bytes  # W (constant block)
                    + f_out_pad * 4                   # bias
                    + blk * f_out_pad * 4)            # f32 output block
        out_pad = pl.pallas_call(
            _fused_gcn_kernel,
            out_shape=jax.ShapeDtypeStruct((n_pad, f_out_pad), jnp.float32),
            grid_spec=pltpu.PrefetchScalarGridSpec(
                num_scalar_prefetch=0,
                grid=(grid_m, grid_k),
                in_specs=[
                    pl.BlockSpec((blk, blk), lambda i, k: (i, k)),            # adj
                    pl.BlockSpec((blk, f_in_pad), lambda i, k: (k, 0)),       # x
                    pl.BlockSpec((f_in_pad, f_out_pad), lambda i, k: (0, 0)),  # W
                    pl.BlockSpec((1, f_out_pad), lambda i, k: (0, 0)),        # bias
                ],
                out_specs=pl.BlockSpec((blk, f_out_pad), lambda i, k: (i, 0)),
            ),
            compiler_params=pltpu.CompilerParams(
                dimension_semantics=("parallel", "arbitrary"),
                vmem_limit_bytes=_vmem_limit(plan)),
            cost_estimate=pl.CostEstimate(
                flops=int(2 * n_pad * n_pad * f_out_pad
                          + 2 * grid_m * n_pad * f_in_pad * f_out_pad),
                transcendentals=0,
                bytes_accessed=int(mm_bytes * (n_pad * n_pad
                                               + grid_m * n_pad * f_in_pad
                                               + f_in_pad * f_out_pad)
                                   + 4 * n_pad * f_out_pad)),
        )(adjp, xp, wp, bp)
        return out_pad[:n, :f_out]

    # -------- two-pass fallback for very wide f_in (support materialized) ----- #
    # TODO(synk): when N * f_out is too large for VMEM-resident reuse, support is
    # simply re-streamed once per row tile (correct, just more HBM traffic).
    plan1 = 2 * (blk * f_in_pad + f_in_pad * f_out_pad + blk * f_out_pad) * mm_bytes
    support = pl.pallas_call(
        _support_kernel,
        out_shape=jax.ShapeDtypeStruct((n_pad, f_out_pad), matmul_dtype),
        grid_spec=pltpu.PrefetchScalarGridSpec(
            num_scalar_prefetch=0,
            grid=(grid_m,),
            in_specs=[
                pl.BlockSpec((blk, f_in_pad), lambda i: (i, 0)),
                pl.BlockSpec((f_in_pad, f_out_pad), lambda i: (0, 0)),
            ],
            out_specs=pl.BlockSpec((blk, f_out_pad), lambda i: (i, 0)),
        ),
        compiler_params=pltpu.CompilerParams(
            dimension_semantics=("parallel",),
            vmem_limit_bytes=_vmem_limit(plan1)),
        cost_estimate=pl.CostEstimate(
            flops=int(2 * n_pad * f_in_pad * f_out_pad),
            transcendentals=0,
            bytes_accessed=int(mm_bytes * (n_pad * f_in_pad
                                           + f_in_pad * f_out_pad
                                           + n_pad * f_out_pad))),
    )(xp, wp)

    plan2 = 2 * (blk * blk * mm_bytes + blk * f_out_pad * mm_bytes
                 + f_out_pad * 4 + blk * f_out_pad * 4)
    out_pad = pl.pallas_call(
        _aggregate_kernel,
        out_shape=jax.ShapeDtypeStruct((n_pad, f_out_pad), jnp.float32),
        grid_spec=pltpu.PrefetchScalarGridSpec(
            num_scalar_prefetch=0,
            grid=(grid_m, grid_k),
            in_specs=[
                pl.BlockSpec((blk, blk), lambda i, k: (i, k)),        # adj
                pl.BlockSpec((blk, f_out_pad), lambda i, k: (k, 0)),  # support
                pl.BlockSpec((1, f_out_pad), lambda i, k: (0, 0)),    # bias
            ],
            out_specs=pl.BlockSpec((blk, f_out_pad), lambda i, k: (i, 0)),
        ),
        compiler_params=pltpu.CompilerParams(
            dimension_semantics=("parallel", "arbitrary"),
            vmem_limit_bytes=_vmem_limit(plan2)),
        cost_estimate=pl.CostEstimate(
            flops=int(2 * n_pad * n_pad * f_out_pad),
            transcendentals=0,
            bytes_accessed=int(mm_bytes * (n_pad * n_pad
                                           + grid_m * n_pad * f_out_pad)
                               + 4 * n_pad * f_out_pad)),
    )(adjp, support, bp)
    return out_pad[:n, :f_out]


# ----------------------------------- main ------------------------------------- #

if __name__ == "__main__":
    key = jax.random.PRNGKey(0)
    n_nodes, in_features, out_features = 8, 16, 8

    key, kx, ka, kw, kb = jax.random.split(key, 5)
    x = jax.random.normal(kx, (n_nodes, in_features), jnp.float32)

    # Symmetric normalized dense adjacency (dense stand-in for the sparse adj
    # that torch.spmm would consume).
    a_raw = (jax.random.uniform(ka, (n_nodes, n_nodes)) > 0.5).astype(jnp.float32)
    a_sym = jnp.maximum(a_raw, a_raw.T) + jnp.eye(n_nodes, dtype=jnp.float32)
    d_inv_sqrt = 1.0 / jnp.sqrt(jnp.sum(a_sym, axis=1))
    adj = a_sym * d_inv_sqrt[:, None] * d_inv_sqrt[None, :]

    # Parameter init matching GraphConvolution.reset_parameters:
    # stdv = 1 / sqrt(weight.size(1)) = 1 / sqrt(out_features), uniform(+-stdv).
    stdv = 1.0 / math.sqrt(out_features)
    weight = jax.random.uniform(kw, (in_features, out_features), jnp.float32,
                                -stdv, stdv)
    bias = jax.random.uniform(kb, (out_features,), jnp.float32, -stdv, stdv)

    ref = adj @ (x @ weight) + bias[None, :]

    # 1) Default path: fused kernel, bf16 MXU inputs, f32 accumulation.
    out_bf16 = jax.block_until_ready(graph_convolution(x, adj, weight, bias))
    assert out_bf16.shape == (n_nodes, out_features), out_bf16.shape
    # bf16-rounded reference (what the kernel actually computes, modulo
    # f32 accumulation order):
    xb = x.astype(jnp.bfloat16).astype(jnp.float32)
    ab = adj.astype(jnp.bfloat16).astype(jnp.float32)
    wb = weight.astype(jnp.bfloat16).astype(jnp.float32)
    sup_b = (xb @ wb).astype(jnp.bfloat16).astype(jnp.float32)
    ref_bf16 = ab @ sup_b + bias[None, :]
    assert jnp.allclose(out_bf16, ref_bf16, atol=1e-2, rtol=1e-2), \
        float(jnp.max(jnp.abs(out_bf16 - ref_bf16)))
    assert jnp.allclose(out_bf16, ref, atol=1e-1, rtol=1e-1), \
        float(jnp.max(jnp.abs(out_bf16 - ref)))

    # 2) f32 path through the fused kernel: exactness check.
    out_f32 = jax.block_until_ready(
        graph_convolution(x, adj, weight, bias, matmul_dtype=jnp.float32))
    assert jnp.allclose(out_f32, ref, atol=1e-5, rtol=1e-5), \
        float(jnp.max(jnp.abs(out_f32 - ref)))

    # 3) Force the two-pass fallback (used for very wide f_in) and check it too.
    out_2p = jax.block_until_ready(
        graph_convolution(x, adj, weight, bias, matmul_dtype=jnp.float32,
                          fuse_threshold=0))
    assert jnp.allclose(out_2p, ref, atol=1e-5, rtol=1e-5), \
        float(jnp.max(jnp.abs(out_2p - ref)))

    # 4) bias=None path (module registers no bias parameter).
    out_nb = jax.block_until_ready(
        graph_convolution(x, adj, weight, None, matmul_dtype=jnp.float32))
    ref_nb = adj @ (x @ weight)
    assert jnp.allclose(out_nb, ref_nb, atol=1e-5, rtol=1e-5), \
        float(jnp.max(jnp.abs(out_nb - ref_nb)))

    print("KERNEL_OK")
</pallas_src>

<mosaic_0001>
module attributes {stable_mosaic.version = 11 : i64} {
  func.func @_fused_gcn_kernel(%arg0: i32, %arg1: i32, %arg2: memref<128x128xbf16, #tpu.memory_space<vmem>>, %arg3: memref<128x128xbf16, #tpu.memory_space<vmem>>, %arg4: memref<128x128xbf16, #tpu.memory_space<vmem>>, %arg5: memref<1x128xf32, #tpu.memory_space<vmem>>, %arg6: memref<128x128xf32, #tpu.memory_space<vmem>>) attributes {dimension_semantics = [#tpu.dimension_semantics<parallel>, #tpu.dimension_semantics<arbitrary>], iteration_bounds = array<i64: 1, 1>, scalar_prefetch = 0 : i64, scratch_operands = 0 : i64, tpu.core_type = #tpu.core_type<tc>, window_params = [{transform_indices = @transform_0, window_bounds = array<i64: 128, 128>}, {transform_indices = @transform_1, window_bounds = array<i64: 128, 128>}, {pipeline_mode = #tpu.pipeline_mode<synchronous>, transform_indices = @transform_2, window_bounds = array<i64: 128, 128>}, {pipeline_mode = #tpu.pipeline_mode<synchronous>, transform_indices = @transform_3, window_bounds = array<i64: 1, 128>}, {transform_indices = @transform_4, window_bounds = array<i64: 128, 128>}]} {
    %c0_i32 = arith.constant 0 : i32
    %0 = arith.cmpi eq, %arg1, %c0_i32 : i32
    %1 = arith.extui %0 : i1 to i32
    %c0_i32_0 = arith.constant 0 : i32
    %2 = arith.cmpi ne, %1, %c0_i32_0 : i32
    scf.if %2 {
      %c0_11 = arith.constant 0 : index
      %c0_12 = arith.constant 0 : index
      %12 = vector.load %arg5[%c0_11, %c0_12] : memref<1x128xf32, #tpu.memory_space<vmem>>, vector<1x128xf32>
      %13 = vector.shape_cast %12 : vector<1x128xf32> to vector<1x128xf32>
      %14 = vector.broadcast %13 : vector<1x128xf32> to vector<128x128xf32>
      %c0_13 = arith.constant 0 : index
      %c0_14 = arith.constant 0 : index
      %15 = vector.load %arg6[%c0_13, %c0_14] : memref<128x128xf32, #tpu.memory_space<vmem>>, vector<128x128xf32>
      tpu.vector_store %arg6[%c0_13, %c0_14], %14 {strides = array<i32>} : memref<128x128xf32, #tpu.memory_space<vmem>>, vector<128x128xf32>,
    } else {
    }
    %c0 = arith.constant 0 : index
    %c0_1 = arith.constant 0 : index
    %3 = vector.load %arg3[%c0, %c0_1] : memref<128x128xbf16, #tpu.memory_space<vmem>>, vector<128x128xbf16>
    %c0_2 = arith.constant 0 : index
    %c0_3 = arith.constant 0 : index
    %4 = vector.load %arg4[%c0_2, %c0_3] : memref<128x128xbf16, #tpu.memory_space<vmem>>, vector<128x128xbf16>
    %cst = arith.constant dense<0.000000e+00> : vector<128x128xf32>
    %5 = tpu.matmul %3, %4, %cst {dimension_numbers = #tpu.dot_dimension_numbers<[1], [0], [0], [1], [0, 0, 1, 1], [], []>} : vector<128x128xbf16>, vector<128x128xbf16>, vector<128x128xf32> -> vector<128x128xf32>
    %c0_4 = arith.constant 0 : index
    %c0_5 = arith.constant 0 : index
    %6 = vector.load %arg6[%c0_4, %c0_5] : memref<128x128xf32, #tpu.memory_space<vmem>>, vector<128x128xf32>
    %c0_6 = arith.constant 0 : index
    %c0_7 = arith.constant 0 : index
    %7 = vector.load %arg2[%c0_6, %c0_7] : memref<128x128xbf16, #tpu.memory_space<vmem>>, vector<128x128xbf16>
    %8 = arith.truncf %5 : vector<128x128xf32> to vector<128x128xbf16>
    %cst_8 = arith.constant dense<0.000000e+00> : vector<128x128xf32>
    %9 = tpu.matmul %7, %8, %cst_8 {dimension_numbers = #tpu.dot_dimension_numbers<[1], [0], [0], [1], [0, 0, 1, 1], [], []>} : vector<128x128xbf16>, vector<128x128xbf16>, vector<128x128xf32> -> vector<128x128xf32>
    %10 = arith.addf %6, %9 : vector<128x128xf32>
    %c0_9 = arith.constant 0 : index
    %c0_10 = arith.constant 0 : index
    %11 = vector.load %arg6[%c0_9, %c0_10] : memref<128x128xf32, #tpu.memory_space<vmem>>, vector<128x128xf32>
    tpu.vector_store %arg6[%c0_9, %c0_10], %10 {strides = array<i32>} : memref<128x128xf32, #tpu.memory_space<vmem>>, vector<128x128xf32>,
    return
  }
  func.func @transform_0(%arg0: i32, %arg1: i32) -> (i32, i32) {
    %c0_i32 = arith.constant 0 : i32
    return %arg0, %arg1 : i32, i32
  }
  func.func @transform_1(%arg0: i32, %arg1: i32) -> (i32, i32) {
    %c0_i32 = arith.constant 0 : i32
    %c0_i32_0 = arith.constant 0 : i32
    return %arg1, %c0_i32 : i32, i32
  }
  func.func @transform_2(%arg0: i32, %arg1: i32) -> (i32, i32) {
    %c0_i32 = arith.constant 0 : i32
    %c0_i32_0 = arith.constant 0 : i32
    %c0_i32_1 = arith.constant 0 : i32
    return %c0_i32, %c0_i32_0 : i32, i32
  }
  func.func @transform_3(%arg0: i32, %arg1: i32) -> (i32, i32) {
    %c0_i32 = arith.constant 0 : i32
    %c0_i32_0 = arith.constant 0 : i32
    %c0_i32_1 = arith.constant 0 : i32
    return %c0_i32, %c0_i32_0 : i32, i32
  }
  func.func @transform_4(%arg0: i32, %arg1: i32) -> (i32, i32) {
    %c0_i32 = arith.constant 0 : i32
    %c0_i32_0 = arith.constant 0 : i32
    return %arg0, %c0_i32 : i32, i32
  }
}

</mosaic_0001>

<bundles_post_ra>
// kernel: tpu_custom_call.1
= control target key start
LH: loop header
LB: loop body
LE: loop exit
PB: predicated region body
PF: predicated region fallthrough
CT: control target
= control target key end

     0   :  { %9 = vsyncpa [#allocation3], 0  ;;  %s894_s0 = inlined_call_operand.hbm [shape: bf16[128,128], index: 0, kind: input, shape index: {}]   ;;  %s895_s1 = inlined_call_operand.hbm [shape: bf16[128,128], index: 1, kind: input, shape index: {}]   ;;  %s896_s2 = inlined_call_operand.hbm [shape: bf16[128,128], index: 2, kind: input, shape index: {}]   ;;  %s897_s3 = inlined_call_operand.vmem [shape: f32[1,128], index: 3, kind: input, shape index: {}]   ;;  %s898_s4 = inlined_call_operand.hbm [shape: f32[128,128], index: 4, kind: output, shape index: {}]  }
   0x1   :  { %10 = vsyncpa [#allocation6], 0 }
   0x2   :  { %11 = vsyncpa [#allocation4], 0  ;;  %s794_s15 = smov [#allocation5]   ;;  %s795_s17 = smov [#allocation2]  }
   0x3   :  { %s29_s16 = sshll.u32 %s794_s15, 4  ;;  %s17_s18 = sshll.u32 %s795_s17, 4  ;;  %s30_s16 = int_to_ptr.vmem [resolvable:$true] %s29_s16  ;;  %s827_s18 = int_to_ptr.vmem [resolvable:$true] %s17_s18 }
   0x4   :  { %s700_s21 = scalar_lea.hbm %s895_s1, 1024 }
   0x5   :  { %p701_p0 = scmp.ne.s32.totalorder %s895_s1, %s700_s21  ;;  %p704_p1 = scmp.lt.u32.totalorder %s700_s21, %s895_s1 }
   0x7   :  { %p706_p2 = pnand %p704_p1, %p701_p0 }
   0x9   :  { %709 = shalt.err (!%p706_p2)
}
   0xa   :  { %s710_s26 = scalar_lea.vmem %s30_s16, 1024  ;;  %p715_p4 = scmp.lt.s32.totalorder %s30_s16, %s30_s16 }
   0xb   :  { %p711_p3 = scmp.ne.s32.totalorder %s30_s16, %s710_s26  ;;  %p716_p5 = scmp.lt.s32.totalorder %s710_s26, %s710_s26 }
   0xd   :  { %p717_p6 = por %p716_p5, %p715_p4 }
   0xf   :  { %p718_p7 = pnand %p717_p6, %p711_p3 }
  0x11   :  { %721 = shalt.err (!%p718_p7)
}
  0x12   :  { %s796_s27 = smov 64   ;;  %s797_s28 = smov 4  }
  0x13   :  { %35 = dma.hbm_to_vmem [thread:$0]  %s895_s1, 1024, %s30_s16, [#allocation6], %s796_s27, %s796_s27, %s797_s28  }
  0x14   :  { %s722_s7 = scalar_lea.hbm %s894_s0, 1024 }
  0x15   :  { %p723_p8 = scmp.ne.s32.totalorder %s894_s0, %s722_s7  ;;  %p726_p9 = scmp.lt.u32.totalorder %s722_s7, %s894_s0 }
  0x17   :  { %p728_p10 = pnand %p726_p9, %p723_p8 }
  0x19   :  { %731 = shalt.err (!%p728_p10)
}
  0x1a   :  { %s732_s12 = scalar_lea.vmem %s827_s18, 1024  ;;  %p737_p12 = scmp.lt.s32.totalorder %s827_s18, %s827_s18 }
  0x1b   :  { %p733_p11 = scmp.ne.s32.totalorder %s827_s18, %s732_s12  ;;  %p738_p13 = scmp.lt.s32.totalorder %s732_s12, %s732_s12 }
  0x1d   :  { %p739_p0 = por %p738_p13, %p737_p12 }
  0x1f   :  { %p740_p1 = pnand %p739_p0, %p733_p11 }
  0x21   :  { %743 = shalt.err (!%p740_p1)
}
  0x22   :  { %23 = dma.hbm_to_vmem [thread:$0]  %s894_s0, 1024, %s827_s18, [#allocation3], %s796_s27, %s796_s27, %s797_s28  }
  0x23   :  { %s798_s14 = smov [#allocation7]   ;;  %s744_s19 = scalar_lea.hbm %s896_s2, 1024 }
  0x24   :  { %s41_s15 = sshll.u32 %s798_s14, 4  ;;  %p745_p2 = scmp.ne.s32.totalorder %s896_s2, %s744_s19  ;;  %s42_s15 = int_to_ptr.vmem [resolvable:$true] %s41_s15 }
  0x25   :  { %p748_p3 = scmp.lt.u32.totalorder %s744_s19, %s896_s2 }
  0x27   :  { %p750_p4 = pnand %p748_p3, %p745_p2 }
  0x29   :  { %753 = shalt.err (!%p750_p4)
}
  0x2a   :  { %s754_s24 = scalar_lea.vmem %s42_s15, 1024  ;;  %p759_p6 = scmp.lt.s32.totalorder %s42_s15, %s42_s15 }
  0x2b   :  { %p755_p5 = scmp.ne.s32.totalorder %s42_s15, %s754_s24  ;;  %p760_p7 = scmp.lt.s32.totalorder %s754_s24, %s754_s24 }
  0x2d   :  { %p761_p8 = por %p760_p7, %p759_p6 }
  0x2f   :  { %p762_p9 = pnand %p761_p8, %p755_p5 }
  0x31   :  { %765 = shalt.err (!%p762_p9)
}
  0x32   :  { %47 = dma.hbm_to_vmem [thread:$0]  %s896_s2, 1024, %s42_s15, [#allocation6], %s796_s27, %s796_s27, %s797_s28  }
  0x33   :  { %788 = dma.done.wait [#allocation3], 1024  }
  0x34   :  { %789 = vsyncadd [#allocation3], 4294966272 }
  0x35   :  { %790 = dma.done.wait [#allocation6], 2048  }
  0x36   :  { %791 = vsyncadd [#allocation6], 4294965248  ;;  %v676_v0 = vld [vmem:[#allocation7] sm:$0xff]   ;;  %v677_v1 = vld [vmem:[#allocation7 + $0x8] sm:$0xff]  }
  0x37   :  { %604 = vmatprep.subr.bf16.mxu0 %v676_v0  ;;  %v678_v2 = vld [vmem:[#allocation7 + $0x10] sm:$0xff]   ;;  %v679_v3 = vld [vmem:[#allocation7 + $0x18] sm:$0xff]   ;;  %v684_v4 = vld [vmem:[#allocation5] sm:$0xff]  }
  0x38   :  { %605 = vmatpush3.bf16.msra.mxu0 %v676_v0  ;;  %620 = vmatprep.mubr.bf16.mxu0 %v684_v4  ;;  %v680_v5 = vld [vmem:[#allocation7 + $0x20] sm:$0xff]   ;;  %v681_v6 = vld [vmem:[#allocation7 + $0x28] sm:$0xff]   ;;  %v682_v7 = vld [vmem:[#allocation7 + $0x30] sm:$0xff]  }
  0x39   :  { %606 = vmatprep.subr.bf16.mxu0 %v677_v1  ;;  %v683_v8 = vld [vmem:[#allocation7 + $0x38] sm:$0xff]   ;;  %v685_v9 = vld [vmem:[#allocation5 + $0x8] sm:$0xff]   ;;  %v686_v10 = vld [vmem:[#allocation5 + $0x10] sm:$0xff]  }
  0x3a   :  { %v687_v11 = vld [vmem:[#allocation5 + $0x18] sm:$0xff]   ;;  %v688_v12 = vld [vmem:[#allocation5 + $0x20] sm:$0xff]   ;;  %v689_v13 = vld [vmem:[#allocation5 + $0x28] sm:$0xff]  }
  0x3b   :  { %v690_v14 = vld [vmem:[#allocation5 + $0x30] sm:$0xff]   ;;  %v691_v15 = vld [vmem:[#allocation5 + $0x38] sm:$0xff]   ;;  %v692_v16 = vld [vmem:[#allocation2] sm:$0xff]  }
  0x3c   :  { %607 = vmatpush3.bf16.msra.mxu0 %v677_v1  ;;  %652 = vmatprep.mubr.bf16.mxu1 %v692_v16  ;;  %v693_v41 = vld [vmem:[#allocation2 + $0x8] sm:$0xff]   ;;  %v694_v42 = vld [vmem:[#allocation2 + $0x10] sm:$0xff]   ;;  %v695_v43 = vld [vmem:[#allocation2 + $0x18] sm:$0xff]  }
  0x3d   :  { %608 = vmatprep.subr.bf16.mxu0 %v678_v2  ;;  %v696_v44 = vld [vmem:[#allocation2 + $0x20] sm:$0xff]   ;;  %v697_v45 = vld [vmem:[#allocation2 + $0x28] sm:$0xff]   ;;  %v698_v46 = vld [vmem:[#allocation2 + $0x30] sm:$0xff]  }
  0x3e   :  { %v699_v47 = vld [vmem:[#allocation2 + $0x38] sm:$0xff]   ;;  %v547_v48 = vld [vmem:[%s897_s3] ss:$0 sm:$0xff]  ;;  %s799_s3 = smov [#allocation8]  }
  0x3f   :  { %s534_s26 = sshll.u32 %s799_s3, 4  ;;  %s535_s26 = int_to_ptr.vmem [resolvable:$true] %s534_s26 }
  0x40   :  { %609 = vmatpush3.bf16.msra.mxu0 %v678_v2  ;;  %s766_s27 = scalar_lea.vmem %s535_s26, 2048  ;;  %p771_p11 = scmp.lt.s32.totalorder %s535_s26, %s535_s26 }
  0x41   :  { %610 = vmatprep.subr.bf16.mxu0 %v679_v3  ;;  %p767_p10 = scmp.ne.s32.totalorder %s535_s26, %s766_s27  ;;  %p772_p12 = scmp.lt.s32.totalorder %s766_s27, %s766_s27 }
  0x43   :  { %p773_p13 = por %p772_p12, %p771_p11 }
  0x44   :  { %611 = vmatpush3.bf16.msra.mxu0 %v679_v3 }
  0x45   :  { %612 = vmatprep.subr.bf16.mxu0 %v680_v5  ;;  %p774_p0 = pnand %p773_p13, %p767_p10 }
  0x48   :  { %613 = vmatpush3.bf16.msra.mxu0 %v680_v5 }
  0x49   :  { %614 = vmatprep.subr.bf16.mxu0 %v681_v6 }
  0x4c   :  { %615 = vmatpush3.bf16.msra.mxu0 %v681_v6 }
  0x4d   :  { %616 = vmatprep.subr.bf16.mxu0 %v682_v7 }
  0x50   :  { %617 = vmatpush3.bf16.msra.mxu0 %v682_v7 }
  0x51   :  { %618 = vmatprep.subr.bf16.mxu0 %v683_v8 }
  0x54   :  { %619 = vmatpush3.bf16.msra.mxu0 %v683_v8 }
  0x57   :  { %621 = vmatmul.mubr.bf16.vlgmr.msra.gmra.mrb[0].mxu0 %v685_v9 }
  0x58   :  { %624 = vmatprep.mubr.bf16.mxu0 %v686_v10 }
  0x5f   :  { %625 = vmatmul.mubr.bf16.gmra.mrb[4].mxu0 %v687_v11 }
  0x60   :  { %628 = vmatprep.mubr.bf16.mxu0 %v688_v12 }
  0x67   :  { %629 = vmatmul.mubr.bf16.gmra.mrb[8].mxu0 %v689_v13 }
  0x68   :  { %632 = vmatprep.mubr.bf16.mxu0 %v690_v14 }
  0x6f   :  { %633 = vmatmul.mubr.bf16.gmra.mrb[12].mxu0 %v691_v15 }
 0x12a   :  { %v622_v17 = vpop.f32.mrb[0].mxu0 }
 0x12b   :  { %v249_v18 = vpop.f32.mrb[1].mxu0 }
 0x12c   :  { %v623_v19 = vpop.f32.mrb[2].mxu0 }
 0x12d   :  { %v345_v20 = vpack.c.bf16 %v623_v19, %v622_v17  ;;  %v252_v21 = vpop.f32.mrb[3].mxu0 }
 0x12e   :  { %v344_v22 = vpack.c.bf16 %v252_v21, %v249_v18 }
 0x130   :  { %636 = vmatprep.subr.bf16.mxu1 %v344_v22 }
 0x131   :  { %637 = vmatpush3.bf16.msra.mxu1 %v344_v22 }
 0x132   :  { %v626_v23 = vpop.f32.mrb[4].mxu0  ;;  %638 = vmatprep.subr.bf16.mxu1 %v345_v20 }
 0x133   :  { %v265_v24 = vpop.f32.mrb[5].mxu0 }
 0x134   :  { %v627_v25 = vpop.f32.mrb[6].mxu0 }
 0x135   :  { %v347_v26 = vpack.c.bf16 %v627_v25, %v626_v23  ;;  %v268_v27 = vpop.f32.mrb[7].mxu0  ;;  %639 = vmatpush3.bf16.msra.mxu1 %v345_v20 }
 0x136   :  { %v346_v28 = vpack.c.bf16 %v268_v27, %v265_v24 }
 0x138   :  { %640 = vmatprep.subr.bf16.mxu1 %v346_v28 }
 0x139   :  { %641 = vmatpush3.bf16.msra.mxu1 %v346_v28 }
 0x13a   :  { %v630_v29 = vpop.f32.mrb[8].mxu0  ;;  %642 = vmatprep.subr.bf16.mxu1 %v347_v26 }
 0x13b   :  { %v281_v30 = vpop.f32.mrb[9].mxu0 }
 0x13c   :  { %v631_v31 = vpop.f32.mrb[10].mxu0 }
 0x13d   :  { %v349_v32 = vpack.c.bf16 %v631_v31, %v630_v29  ;;  %v284_v33 = vpop.f32.mrb[11].mxu0  ;;  %643 = vmatpush3.bf16.msra.mxu1 %v347_v26 }
 0x13e   :  { %v348_v34 = vpack.c.bf16 %v284_v33, %v281_v30 }
 0x140   :  { %644 = vmatprep.subr.bf16.mxu1 %v348_v34 }
 0x141   :  { %645 = vmatpush3.bf16.msra.mxu1 %v348_v34 }
 0x142   :  { %v634_v35 = vpop.f32.mrb[12].mxu0  ;;  %646 = vmatprep.subr.bf16.mxu1 %v349_v32 }
 0x143   :  { %v297_v36 = vpop.f32.mrb[13].mxu0 }
 0x144   :  { %v635_v37 = vpop.f32.mrb[14].mxu0 }
 0x145   :  { %v351_v38 = vpack.c.bf16 %v635_v37, %v634_v35  ;;  %v300_v39 = vpop.f32.mrb[15].mxu0  ;;  %647 = vmatpush3.bf16.msra.mxu1 %v349_v32 }
 0x146   :  { %v350_v40 = vpack.c.bf16 %v300_v39, %v297_v36 }
 0x148   :  { %648 = vmatprep.subr.bf16.mxu1 %v350_v40 }
 0x149   :  { %649 = vmatpush3.bf16.msra.mxu1 %v350_v40 }
 0x14a   :  { %650 = vmatprep.subr.bf16.mxu1 %v351_v38 }
 0x14d   :  { %651 = vmatpush3.bf16.msra.mxu1 %v351_v38 }
 0x150   :  { %653 = vmatmul.mubr.bf16.vlgmr.msra.gmra.mrb[0].mxu1 %v693_v41 }
 0x151   :  { %656 = vmatprep.mubr.bf16.mxu1 %v694_v42 }
 0x158   :  { %657 = vmatmul.mubr.bf16.gmra.mrb[4].mxu1 %v695_v43 }
 0x159   :  { %660 = vmatprep.mubr.bf16.mxu1 %v696_v44 }
 0x160   :  { %661 = vmatmul.mubr.bf16.gmra.mrb[8].mxu1 %v697_v45 }
 0x161   :  { %664 = vmatprep.mubr.bf16.mxu1 %v698_v46 }
 0x168   :  { %665 = vmatmul.mubr.bf16.gmra.mrb[12].mxu1 %v699_v47 }
 0x223   :  { %v654_v49 = vpop.f32.mrb[0].mxu1 }
 0x224   :  { %v499_v50 = vadd.f32 %v654_v49, %v547_v48  ;;  %v434_v51 = vpop.f32.mrb[1].mxu1 }
 0x225   :  { %v497_v52 = vadd.f32 %v547_v48, %v434_v51  ;;  %v655_v53 = vpop.f32.mrb[2].mxu1 }
 0x226   :  { %515 = vst [vmem:[#allocation8 + $0x10] sm:$0xff] %v499_v50  ;;  %v500_v54 = vadd.f32 %v655_v53, %v547_v48  ;;  %v437_v55 = vpop.f32.mrb[3].mxu1 }
 0x227   :  { %513 = vst [vmem:[#allocation8] sm:$0xff] %v497_v52  ;;  %v498_v56 = vadd.f32 %v547_v48, %v437_v55 }
 0x228   :  { %516 = vst [vmem:[#allocation8 + $0x18] sm:$0xff] %v500_v54 }
 0x229   :  { %514 = vst [vmem:[#allocation8 + $0x8] sm:$0xff] %v498_v56 }
 0x22b   :  { %v658_v57 = vpop.f32.mrb[4].mxu1 }
 0x22c   :  { %v503_v58 = vadd.f32 %v658_v57, %v547_v48  ;;  %v450_v59 = vpop.f32.mrb[5].mxu1 }
 0x22d   :  { %v501_v60 = vadd.f32 %v547_v48, %v450_v59  ;;  %v659_v61 = vpop.f32.mrb[6].mxu1 }
 0x22e   :  { %519 = vst [vmem:[#allocation8 + $0x30] sm:$0xff] %v503_v58  ;;  %v504_v62 = vadd.f32 %v659_v61, %v547_v48  ;;  %v453_v63 = vpop.f32.mrb[7].mxu1 }
 0x22f   :  { %517 = vst [vmem:[#allocation8 + $0x20] sm:$0xff] %v501_v60  ;;  %v502_v0 = vadd.f32 %v547_v48, %v453_v63 }
 0x230   :  { %520 = vst [vmem:[#allocation8 + $0x38] sm:$0xff] %v504_v62 }
 0x231   :  { %518 = vst [vmem:[#allocation8 + $0x28] sm:$0xff] %v502_v0 }
 0x233   :  { %v662_v1 = vpop.f32.mrb[8].mxu1 }
 0x234   :  { %v507_v2 = vadd.f32 %v662_v1, %v547_v48  ;;  %v466_v3 = vpop.f32.mrb[9].mxu1 }
 0x235   :  { %v505_v4 = vadd.f32 %v547_v48, %v466_v3  ;;  %v663_v5 = vpop.f32.mrb[10].mxu1 }
 0x236   :  { %523 = vst [vmem:[#allocation8 + $0x50] sm:$0xff] %v507_v2  ;;  %v508_v6 = vadd.f32 %v663_v5, %v547_v48  ;;  %v469_v7 = vpop.f32.mrb[11].mxu1 }
 0x237   :  { %521 = vst [vmem:[#allocation8 + $0x40] sm:$0xff] %v505_v4  ;;  %v506_v8 = vadd.f32 %v547_v48, %v469_v7 }
 0x238   :  { %524 = vst [vmem:[#allocation8 + $0x58] sm:$0xff] %v508_v6 }
 0x239   :  { %522 = vst [vmem:[#allocation8 + $0x48] sm:$0xff] %v506_v8 }
 0x23b   :  { %v666_v9 = vpop.f32.mrb[12].mxu1 }
 0x23c   :  { %v511_v10 = vadd.f32 %v666_v9, %v547_v48  ;;  %v482_v11 = vpop.f32.mrb[13].mxu1 }
 0x23d   :  { %v509_v12 = vadd.f32 %v547_v48, %v482_v11  ;;  %v667_v13 = vpop.f32.mrb[14].mxu1 }
 0x23e   :  { %527 = vst [vmem:[#allocation8 + $0x70] sm:$0xff] %v511_v10  ;;  %v512_v14 = vadd.f32 %v667_v13, %v547_v48  ;;  %v485_v15 = vpop.f32.mrb[15].mxu1 }
 0x23f   :  { %525 = vst [vmem:[#allocation8 + $0x60] sm:$0xff] %v509_v12  ;;  %v510_v16 = vadd.f32 %v547_v48, %v485_v15 }
 0x240   :  { %528 = vst [vmem:[#allocation8 + $0x78] sm:$0xff] %v512_v14 }
 0x241   :  { %526 = vst [vmem:[#allocation8 + $0x68] sm:$0xff] %v510_v16 }
 0x242   :  { %777 = shalt.err (!%p774_p0)
}
 0x243   :  { %s778_s30 = scalar_lea.hbm %s898_s4, 2048 }
 0x244   :  { %p779_p1 = scmp.ne.s32.totalorder %s898_s4, %s778_s30  ;;  %p782_p2 = scmp.lt.u32.totalorder %s778_s30, %s898_s4 }
 0x246   :  { %p784_p3 = pnand %p782_p2, %p779_p1 }
 0x248   :  { %787 = shalt.err (!%p784_p3)
}
 0x249   :  { %s800_s9 = smov 128   ;;  %s801_s10 = smov 8  }
 0x24a   :  { %540 = dma.vmem_to_hbm [thread:$0]  %s535_s26, 2048, %s898_s4, [#allocation4], %s800_s9, %s800_s9, %s801_s10  }
 0x24b   :  { %792 = dma.done.wait [#allocation4], 2048  }
 0x24c   :  { %793 = vsyncadd [#allocation4], 4294965248 }
 0x24d   :  { %544 = vsyncpa [#allocation3], 1 }
 0x24e   :  { %545 = vsyncpa [#allocation6], 1 }
 0x24f   :  { %546 = vsyncpa [#allocation4], 1 }

</bundles_post_ra>
